<compile_context>
chip_gen: v7x
topology: tpu7x:2x2x1
jax: 0.10.0
libtpu: 0.0.40
codegen_flags: <defaults>
</compile_context>

<pallas_src>
import functools

import jax
import jax.numpy as jnp
from jax.experimental import pallas as pl
from jax.experimental.pallas import tpu as pltpu

LANE = 128
SUBLANE = 8


def _round_up(x, m):
    return (x + m - 1) // m * m


def _pick_tiling(n):
    """Pick a row-tile size TM and padded node count N_pad."""
    n8 = _round_up(max(n, 1), SUBLANE)
    cap = max(n8 // 2, SUBLANE)               # prefer >= 2 row tiles (megacore)
    budget = 24 * 1024 * 1024                 # double-buffered A row-slab budget
    tm = SUBLANE
    for cand in (256, 128, 64, 32, 16, 8):
        if cand <= cap and 2 * cand * _round_up(n8, cand) * 4 <= budget:
            tm = cand
            break
    n_pad = _round_up(n8, tm)
    return tm, n_pad


def _vmem_limit_bytes(tile_m, n_pad, d_in, d_out):
    per_step = 4 * (2 * tile_m * n_pad        # adjacency row tile (double buf)
                    + 2 * tile_m * d_out      # output tile (double buf)
                    + n_pad * d_in            # full feature matrix
                    + d_in * d_out            # weights
                    + n_pad + d_out + 2 * tile_m)
    return int(min(max(3 * per_step, 8 << 20), 48 << 20))  # < 64 MiB (v7x phys)


def _gcn_layer_kernel(adj_ref, drow_ref, dcol_ref, feat_ref, w_ref, b_ref,
                      o_ref, *, tile_m, activation):
    """o[rows] = act( Ahat[rows, :] @ feat @ W + b ) for one TM-row tile.

    Ahat = D^{-1/2} (A + I) D^{-1/2} is built on the fly from the raw adjacency
    tile and the d_inv_sqrt row/column vectors (fused normalization, VPU work
    hidden under the MXU matmuls).
    """
    row0 = pl.program_id(0) * tile_m
    shape = adj_ref.shape                                        # (TM, N_pad)
    rows = jax.lax.broadcasted_iota(jnp.int32, shape, 0) + row0
    cols = jax.lax.broadcasted_iota(jnp.int32, shape, 1)
    eye = jnp.where(rows == cols, 1.0, 0.0)
    a_norm = (adj_ref[...] + eye) * drow_ref[...] * dcol_ref[...]

    # (Ahat_tile @ X) @ W — cheaper association for TM < N, bf16 MXU inputs,
    # f32 accumulation.
    ax = jnp.dot(a_norm.astype(jnp.bfloat16),
                 feat_ref[...].astype(jnp.bfloat16),
                 preferred_element_type=jnp.float32)             # (TM, Din)
    z = jnp.dot(ax.astype(jnp.bfloat16),
                w_ref[...],
                preferred_element_type=jnp.float32)              # (TM, Dout)
    z = z + b_ref[...]                                           # f32 VPU

    if activation == "relu":
        z = jnp.maximum(z, 0.0)
    elif activation == "tanh":
        z = jnp.tanh(z)
    o_ref[...] = z.astype(o_ref.dtype)


def _layer_call(adj_p, d_row, d_col, feat, w, b, *, tile_m, activation,
                out_dtype):
    n_pad = adj_p.shape[0]
    d_in = feat.shape[1]
    d_out = w.shape[1]
    grid = (n_pad // tile_m,)
    kernel = functools.partial(_gcn_layer_kernel, tile_m=tile_m,
                               activation=activation)
    return pl.pallas_call(
        kernel,
        out_shape=jax.ShapeDtypeStruct((n_pad, d_out), out_dtype),
        grid=grid,
        in_specs=[
            pl.BlockSpec((tile_m, n_pad), lambda i: (i, 0)),   # raw adj row tile
            pl.BlockSpec((tile_m, 1), lambda i: (i, 0)),       # d_inv_sqrt rows
            pl.BlockSpec((1, n_pad), lambda i: (0, 0)),        # d_inv_sqrt cols
            pl.BlockSpec((n_pad, d_in), lambda i: (0, 0)),     # features (full)
            pl.BlockSpec((d_in, d_out), lambda i: (0, 0)),     # weight (full)
            pl.BlockSpec((1, d_out), lambda i: (0, 0)),        # bias (full)
        ],
        out_specs=pl.BlockSpec((tile_m, d_out), lambda i: (i, 0)),
        compiler_params=pltpu.CompilerParams(
            dimension_semantics=("parallel",),
            vmem_limit_bytes=_vmem_limit_bytes(tile_m, n_pad, d_in, d_out),
        ),
    )(adj_p, d_row, d_col, feat, w, b)


@jax.jit
def relavant_learner_forward(x, adj, w1, b1, w2, b2):
    """x: (N, in_dim) f32, adj: (N, N) f32 raw adjacency (no self loops).

    h   = relu(Ahat @ x @ W1 + b1)
    out = tanh(Ahat @ h @ W2 + b2)          with Ahat = D^-1/2 (A + I) D^-1/2
    """
    n, in_dim = x.shape
    h_dim = w1.shape[1]
    out_dim = w2.shape[1]

    tm, n_pad = _pick_tiling(n)
    din_p = _round_up(in_dim, LANE)
    dh_p = _round_up(h_dim, LANE)
    dout_p = _round_up(out_dim, LANE)

    # O(N) / single N^2-read glue: degree (with self loop) -> D^{-1/2}.
    deg = jnp.sum(adj, axis=-1) + 1.0
    d_inv_sqrt = jax.lax.rsqrt(deg)

    # Zero-pad to lane/sublane friendly shapes. Exact: padded adjacency
    # rows/cols and padded d_inv_sqrt entries are 0, padded weight rows/cols
    # are 0, so padded positions never leak into the real output slice.
    adj_p = jnp.zeros((n_pad, n_pad), jnp.float32).at[:n, :n].set(adj)
    d_row = jnp.zeros((n_pad, 1), jnp.float32).at[:n, 0].set(d_inv_sqrt)
    d_col = d_row.reshape(1, n_pad)
    x_p = jnp.zeros((n_pad, din_p), jnp.bfloat16).at[:n, :in_dim].set(
        x.astype(jnp.bfloat16))
    w1_p = jnp.zeros((din_p, dh_p), jnp.bfloat16).at[:in_dim, :h_dim].set(
        w1.astype(jnp.bfloat16))
    b1_p = jnp.zeros((1, dh_p), jnp.float32).at[0, :h_dim].set(b1)
    w2_p = jnp.zeros((dh_p, dout_p), jnp.bfloat16).at[:h_dim, :out_dim].set(
        w2.astype(jnp.bfloat16))
    b2_p = jnp.zeros((1, dout_p), jnp.float32).at[0, :out_dim].set(b2)

    h = _layer_call(adj_p, d_row, d_col, x_p, w1_p, b1_p,
                    tile_m=tm, activation="relu", out_dtype=jnp.float32)
    out_p = _layer_call(adj_p, d_row, d_col, h, w2_p, b2_p,
                        tile_m=tm, activation="tanh", out_dtype=jnp.float32)
    return out_p[:n, :out_dim]


def _glorot(key, shape):
    fan_in, fan_out = shape
    limit = jnp.sqrt(6.0 / (fan_in + fan_out))
    return jax.random.uniform(key, shape, jnp.float32, -limit, limit)


def _reference(x, adj, w1, b1, w2, b2):
    n = x.shape[0]
    a = adj + jnp.eye(n, dtype=adj.dtype)
    deg = jnp.sum(a, axis=-1)
    d = 1.0 / jnp.sqrt(deg)
    a_norm = a * d[:, None] * d[None, :]
    h = jnp.maximum(a_norm @ (x @ w1) + b1, 0.0)
    return jnp.tanh(a_norm @ (h @ w2) + b2)


if __name__ == "__main__":
    def run_case(key, n, in_dim, h_dim, out_dim):
        kx, ka, k1, k2, kb1, kb2 = jax.random.split(key, 6)
        x = jax.random.normal(kx, (n, in_dim), jnp.float32)
        raw = jax.random.uniform(ka, (n, n))
        adj = (raw + raw.T > 1.0).astype(jnp.float32)
        adj = adj * (1.0 - jnp.eye(n, dtype=jnp.float32))  # no self loops
        w1 = _glorot(k1, (in_dim, h_dim))
        b1 = 0.1 * jax.random.normal(kb1, (h_dim,), jnp.float32)
        w2 = _glorot(k2, (h_dim, out_dim))
        b2 = 0.1 * jax.random.normal(kb2, (out_dim,), jnp.float32)

        out = jax.block_until_ready(
            relavant_learner_forward(x, adj, w1, b1, w2, b2))
        ref = _reference(x, adj, w1, b1, w2, b2)
        assert out.shape == (n, out_dim)
        max_err = float(jnp.max(jnp.abs(out - ref)))
        # bf16 MXU operands with f32 accumulation -> loose-ish tolerance.
        assert bool(jnp.allclose(out, ref, atol=5e-2, rtol=5e-2)), max_err

    key = jax.random.PRNGKey(0)
    k_small, k_big = jax.random.split(key)
    # Module-consistent demo shapes: N=16 nodes, in_dim=8, h_dim=32, out_dim=16.
    run_case(k_small, 16, 8, 32, 16)
    # Larger graph to exercise the multi-row-tile (parallel grid) path.
    run_case(k_big, 512, 8, 32, 16)
    print("KERNEL_OK")
</pallas_src>

<mosaic_0001>
module attributes {stable_mosaic.version = 11 : i64} {
  func.func @_gcn_layer_kernel(%arg0: i32, %arg1: memref<8x16xf32, #tpu.memory_space<vmem>>, %arg2: memref<8x1xf32, #tpu.memory_space<vmem>>, %arg3: memref<1x16xf32, #tpu.memory_space<vmem>>, %arg4: memref<16x128xbf16, #tpu.memory_space<vmem>>, %arg5: memref<128x128xbf16, #tpu.memory_space<vmem>>, %arg6: memref<1x128xf32, #tpu.memory_space<vmem>>, %arg7: memref<8x128xf32, #tpu.memory_space<vmem>>) attributes {dimension_semantics = [#tpu.dimension_semantics<parallel>], iteration_bounds = array<i64: 2>, scalar_prefetch = 0 : i64, scratch_operands = 0 : i64, tpu.core_type = #tpu.core_type<tc>, window_params = [{transform_indices = @transform_0, window_bounds = array<i64: 8, 16>}, {transform_indices = @transform_1, window_bounds = array<i64: 8, 1>}, {pipeline_mode = #tpu.pipeline_mode<synchronous>, transform_indices = @transform_2, window_bounds = array<i64: 1, 16>}, {pipeline_mode = #tpu.pipeline_mode<synchronous>, transform_indices = @transform_3, window_bounds = array<i64: 16, 128>}, {pipeline_mode = #tpu.pipeline_mode<synchronous>, transform_indices = @transform_4, window_bounds = array<i64: 128, 128>}, {pipeline_mode = #tpu.pipeline_mode<synchronous>, transform_indices = @transform_5, window_bounds = array<i64: 1, 128>}, {transform_indices = @transform_6, window_bounds = array<i64: 8, 128>}]} {
    %c8_i32 = arith.constant 8 : i32
    %0 = arith.muli %arg0, %c8_i32 : i32
    %1 = tpu.iota {dimensions = array<i32: 0>} : vector<8x16xi32>
    %2 = vector.broadcast %0 : i32 to vector<8x16xi32>
    %3 = arith.addi %1, %2 : vector<8x16xi32>
    %4 = tpu.iota {dimensions = array<i32: 1>} : vector<8x16xi32>
    %5 = arith.cmpi eq, %3, %4 : vector<8x16xi32>
    %cst = arith.constant 1.000000e+00 : f32
    %cst_0 = arith.constant 0.000000e+00 : f32
    %6 = vector.broadcast %cst : f32 to vector<8x16xf32>
    %7 = vector.broadcast %cst_0 : f32 to vector<8x16xf32>
    %8 = arith.select %5, %6, %7 : vector<8x16xi1>, vector<8x16xf32>
    %c0 = arith.constant 0 : index
    %c0_1 = arith.constant 0 : index
    %9 = vector.load %arg1[%c0, %c0_1] : memref<8x16xf32, #tpu.memory_space<vmem>>, vector<8x16xf32>
    %10 = arith.addf %9, %8 : vector<8x16xf32>
    %c0_2 = arith.constant 0 : index
    %c0_3 = arith.constant 0 : index
    %11 = vector.load %arg2[%c0_2, %c0_3] : memref<8x1xf32, #tpu.memory_space<vmem>>, vector<8x1xf32>
    %12 = vector.broadcast %11 : vector<8x1xf32> to vector<8x16xf32>
    %13 = arith.mulf %10, %12 : vector<8x16xf32>
    %c0_4 = arith.constant 0 : index
    %c0_5 = arith.constant 0 : index
    %14 = vector.load %arg3[%c0_4, %c0_5] : memref<1x16xf32, #tpu.memory_space<vmem>>, vector<1x16xf32>
    %15 = vector.broadcast %14 : vector<1x16xf32> to vector<8x16xf32>
    %16 = arith.mulf %13, %15 : vector<8x16xf32>
    %17 = arith.truncf %16 : vector<8x16xf32> to vector<8x16xbf16>
    %c0_6 = arith.constant 0 : index
    %c0_7 = arith.constant 0 : index
    %18 = vector.load %arg4[%c0_6, %c0_7] : memref<16x128xbf16, #tpu.memory_space<vmem>>, vector<16x128xbf16>
    %cst_8 = arith.constant dense<0.000000e+00> : vector<8x128xf32>
    %19 = tpu.matmul %17, %18, %cst_8 {dimension_numbers = #tpu.dot_dimension_numbers<[1], [0], [0], [1], [0, 0, 1, 1], [], []>} : vector<8x16xbf16>, vector<16x128xbf16>, vector<8x128xf32> -> vector<8x128xf32>
    %20 = arith.truncf %19 : vector<8x128xf32> to vector<8x128xbf16>
    %c0_9 = arith.constant 0 : index
    %c0_10 = arith.constant 0 : index
    %21 = vector.load %arg5[%c0_9, %c0_10] : memref<128x128xbf16, #tpu.memory_space<vmem>>, vector<128x128xbf16>
    %cst_11 = arith.constant dense<0.000000e+00> : vector<8x128xf32>
    %22 = tpu.matmul %20, %21, %cst_11 {dimension_numbers = #tpu.dot_dimension_numbers<[1], [0], [0], [1], [0, 0, 1, 1], [], []>} : vector<8x128xbf16>, vector<128x128xbf16>, vector<8x128xf32> -> vector<8x128xf32>
    %c0_12 = arith.constant 0 : index
    %c0_13 = arith.constant 0 : index
    %23 = vector.load %arg6[%c0_12, %c0_13] : memref<1x128xf32, #tpu.memory_space<vmem>>, vector<1x128xf32>
    %24 = vector.broadcast %23 : vector<1x128xf32> to vector<8x128xf32>
    %25 = arith.addf %22, %24 : vector<8x128xf32>
    %cst_14 = arith.constant 0.000000e+00 : f32
    %26 = vector.broadcast %cst_14 : f32 to vector<8x128xf32>
    %27 = arith.maximumf %25, %26 : vector<8x128xf32>
    %c0_15 = arith.constant 0 : index
    %c0_16 = arith.constant 0 : index
    %28 = vector.load %arg7[%c0_15, %c0_16] : memref<8x128xf32, #tpu.memory_space<vmem>>, vector<8x128xf32>
    tpu.vector_store %arg7[%c0_15, %c0_16], %27 {strides = array<i32>} : memref<8x128xf32, #tpu.memory_space<vmem>>, vector<8x128xf32>,
    return
  }
  func.func @transform_0(%arg0: i32) -> (i32, i32) {
    %c0_i32 = arith.constant 0 : i32
    %c0_i32_0 = arith.constant 0 : i32
    return %arg0, %c0_i32 : i32, i32
  }
  func.func @transform_1(%arg0: i32) -> (i32, i32) {
    %c0_i32 = arith.constant 0 : i32
    %c0_i32_0 = arith.constant 0 : i32
    return %arg0, %c0_i32 : i32, i32
  }
  func.func @transform_2(%arg0: i32) -> (i32, i32) {
    %c0_i32 = arith.constant 0 : i32
    %c0_i32_0 = arith.constant 0 : i32
    %c0_i32_1 = arith.constant 0 : i32
    return %c0_i32, %c0_i32_0 : i32, i32
  }
  func.func @transform_3(%arg0: i32) -> (i32, i32) {
    %c0_i32 = arith.constant 0 : i32
    %c0_i32_0 = arith.constant 0 : i32
    %c0_i32_1 = arith.constant 0 : i32
    return %c0_i32, %c0_i32_0 : i32, i32
  }
  func.func @transform_4(%arg0: i32) -> (i32, i32) {
    %c0_i32 = arith.constant 0 : i32
    %c0_i32_0 = arith.constant 0 : i32
    %c0_i32_1 = arith.constant 0 : i32
    return %c0_i32, %c0_i32_0 : i32, i32
  }
  func.func @transform_5(%arg0: i32) -> (i32, i32) {
    %c0_i32 = arith.constant 0 : i32
    %c0_i32_0 = arith.constant 0 : i32
    %c0_i32_1 = arith.constant 0 : i32
    return %c0_i32, %c0_i32_0 : i32, i32
  }
  func.func @transform_6(%arg0: i32) -> (i32, i32) {
    %c0_i32 = arith.constant 0 : i32
    %c0_i32_0 = arith.constant 0 : i32
    return %arg0, %c0_i32 : i32, i32
  }
}

module attributes {stable_mosaic.version = 11 : i64} {
  func.func @_gcn_layer_kernel(%arg0: i32, %arg1: memref<8x16xf32, #tpu.memory_space<vmem>>, %arg2: memref<8x1xf32, #tpu.memory_space<vmem>>, %arg3: memref<1x16xf32, #tpu.memory_space<vmem>>, %arg4: memref<16x128xf32, #tpu.memory_space<vmem>>, %arg5: memref<128x128xbf16, #tpu.memory_space<vmem>>, %arg6: memref<1x128xf32, #tpu.memory_space<vmem>>, %arg7: memref<8x128xf32, #tpu.memory_space<vmem>>) attributes {dimension_semantics = [#tpu.dimension_semantics<parallel>], iteration_bounds = array<i64: 2>, scalar_prefetch = 0 : i64, scratch_operands = 0 : i64, tpu.core_type = #tpu.core_type<tc>, window_params = [{transform_indices = @transform_0, window_bounds = array<i64: 8, 16>}, {transform_indices = @transform_1, window_bounds = array<i64: 8, 1>}, {pipeline_mode = #tpu.pipeline_mode<synchronous>, transform_indices = @transform_2, window_bounds = array<i64: 1, 16>}, {pipeline_mode = #tpu.pipeline_mode<synchronous>, transform_indices = @transform_3, window_bounds = array<i64: 16, 128>}, {pipeline_mode = #tpu.pipeline_mode<synchronous>, transform_indices = @transform_4, window_bounds = array<i64: 128, 128>}, {pipeline_mode = #tpu.pipeline_mode<synchronous>, transform_indices = @transform_5, window_bounds = array<i64: 1, 128>}, {transform_indices = @transform_6, window_bounds = array<i64: 8, 128>}]} {
    %c8_i32 = arith.constant 8 : i32
    %0 = arith.muli %arg0, %c8_i32 : i32
    %1 = tpu.iota {dimensions = array<i32: 0>} : vector<8x16xi32>
    %2 = vector.broadcast %0 : i32 to vector<8x16xi32>
    %3 = arith.addi %1, %2 : vector<8x16xi32>
    %4 = tpu.iota {dimensions = array<i32: 1>} : vector<8x16xi32>
    %5 = arith.cmpi eq, %3, %4 : vector<8x16xi32>
    %cst = arith.constant 1.000000e+00 : f32
    %cst_0 = arith.constant 0.000000e+00 : f32
    %6 = vector.broadcast %cst : f32 to vector<8x16xf32>
    %7 = vector.broadcast %cst_0 : f32 to vector<8x16xf32>
    %8 = arith.select %5, %6, %7 : vector<8x16xi1>, vector<8x16xf32>
    %c0 = arith.constant 0 : index
    %c0_1 = arith.constant 0 : index
    %9 = vector.load %arg1[%c0, %c0_1] : memref<8x16xf32, #tpu.memory_space<vmem>>, vector<8x16xf32>
    %10 = arith.addf %9, %8 : vector<8x16xf32>
    %c0_2 = arith.constant 0 : index
    %c0_3 = arith.constant 0 : index
    %11 = vector.load %arg2[%c0_2, %c0_3] : memref<8x1xf32, #tpu.memory_space<vmem>>, vector<8x1xf32>
    %12 = vector.broadcast %11 : vector<8x1xf32> to vector<8x16xf32>
    %13 = arith.mulf %10, %12 : vector<8x16xf32>
    %c0_4 = arith.constant 0 : index
    %c0_5 = arith.constant 0 : index
    %14 = vector.load %arg3[%c0_4, %c0_5] : memref<1x16xf32, #tpu.memory_space<vmem>>, vector<1x16xf32>
    %15 = vector.broadcast %14 : vector<1x16xf32> to vector<8x16xf32>
    %16 = arith.mulf %13, %15 : vector<8x16xf32>
    %17 = arith.truncf %16 : vector<8x16xf32> to vector<8x16xbf16>
    %c0_6 = arith.constant 0 : index
    %c0_7 = arith.constant 0 : index
    %18 = vector.load %arg4[%c0_6, %c0_7] : memref<16x128xf32, #tpu.memory_space<vmem>>, vector<16x128xf32>
    %19 = arith.truncf %18 : vector<16x128xf32> to vector<16x128xbf16>
    %cst_8 = arith.constant dense<0.000000e+00> : vector<8x128xf32>
    %20 = tpu.matmul %17, %19, %cst_8 {dimension_numbers = #tpu.dot_dimension_numbers<[1], [0], [0], [1], [0, 0, 1, 1], [], []>} : vector<8x16xbf16>, vector<16x128xbf16>, vector<8x128xf32> -> vector<8x128xf32>
    %21 = arith.truncf %20 : vector<8x128xf32> to vector<8x128xbf16>
    %c0_9 = arith.constant 0 : index
    %c0_10 = arith.constant 0 : index
    %22 = vector.load %arg5[%c0_9, %c0_10] : memref<128x128xbf16, #tpu.memory_space<vmem>>, vector<128x128xbf16>
    %cst_11 = arith.constant dense<0.000000e+00> : vector<8x128xf32>
    %23 = tpu.matmul %21, %22, %cst_11 {dimension_numbers = #tpu.dot_dimension_numbers<[1], [0], [0], [1], [0, 0, 1, 1], [], []>} : vector<8x128xbf16>, vector<128x128xbf16>, vector<8x128xf32> -> vector<8x128xf32>
    %c0_12 = arith.constant 0 : index
    %c0_13 = arith.constant 0 : index
    %24 = vector.load %arg6[%c0_12, %c0_13] : memref<1x128xf32, #tpu.memory_space<vmem>>, vector<1x128xf32>
    %25 = vector.broadcast %24 : vector<1x128xf32> to vector<8x128xf32>
    %26 = arith.addf %23, %25 : vector<8x128xf32>
    %27 = math.tanh %26 : vector<8x128xf32>
    %c0_14 = arith.constant 0 : index
    %c0_15 = arith.constant 0 : index
    %28 = vector.load %arg7[%c0_14, %c0_15] : memref<8x128xf32, #tpu.memory_space<vmem>>, vector<8x128xf32>
    tpu.vector_store %arg7[%c0_14, %c0_15], %27 {strides = array<i32>} : memref<8x128xf32, #tpu.memory_space<vmem>>, vector<8x128xf32>,
    return
  }
  func.func @transform_0(%arg0: i32) -> (i32, i32) {
    %c0_i32 = arith.constant 0 : i32
    %c0_i32_0 = arith.constant 0 : i32
    return %arg0, %c0_i32 : i32, i32
  }
  func.func @transform_1(%arg0: i32) -> (i32, i32) {
    %c0_i32 = arith.constant 0 : i32
    %c0_i32_0 = arith.constant 0 : i32
    return %arg0, %c0_i32 : i32, i32
  }
  func.func @transform_2(%arg0: i32) -> (i32, i32) {
    %c0_i32 = arith.constant 0 : i32
    %c0_i32_0 = arith.constant 0 : i32
    %c0_i32_1 = arith.constant 0 : i32
    return %c0_i32, %c0_i32_0 : i32, i32
  }
  func.func @transform_3(%arg0: i32) -> (i32, i32) {
    %c0_i32 = arith.constant 0 : i32
    %c0_i32_0 = arith.constant 0 : i32
    %c0_i32_1 = arith.constant 0 : i32
    return %c0_i32, %c0_i32_0 : i32, i32
  }
  func.func @transform_4(%arg0: i32) -> (i32, i32) {
    %c0_i32 = arith.constant 0 : i32
    %c0_i32_0 = arith.constant 0 : i32
    %c0_i32_1 = arith.constant 0 : i32
    return %c0_i32, %c0_i32_0 : i32, i32
  }
  func.func @transform_5(%arg0: i32) -> (i32, i32) {
    %c0_i32 = arith.constant 0 : i32
    %c0_i32_0 = arith.constant 0 : i32
    %c0_i32_1 = arith.constant 0 : i32
    return %c0_i32, %c0_i32_0 : i32, i32
  }
  func.func @transform_6(%arg0: i32) -> (i32, i32) {
    %c0_i32 = arith.constant 0 : i32
    %c0_i32_0 = arith.constant 0 : i32
    return %arg0, %c0_i32 : i32, i32
  }
}

</mosaic_0001>

<bundles_post_ra>
// kernel: relavant_learner_forward.2
= control target key start
LH: loop header
LB: loop body
LE: loop exit
PB: predicated region body
PF: predicated region fallthrough
CT: control target
= control target key end

     0   :  { %s650_s21 = smov 0   ;;  %s713_s0 = inlined_call_operand.vmem [shape: f32[16,16], index: 0, kind: input, shape index: {}]   ;;  %s714_s1 = inlined_call_operand.vmem [shape: f32[16,1], index: 1, kind: input, shape index: {}]   ;;  %s715_s2 = inlined_call_operand.vmem [shape: f32[1,16], index: 2, kind: input, shape index: {}]   ;;  %s716_s3 = inlined_call_operand.vmem [shape: bf16[16,128], index: 3, kind: input, shape index: {}]   ;;  %s717_s4 = inlined_call_operand.vmem [shape: bf16[128,128], index: 4, kind: input, shape index: {}]   ;;  %s718_s5 = inlined_call_operand.vmem [shape: f32[1,128], index: 5, kind: input, shape index: {}]   ;;  %s719_s6 = inlined_call_operand.vmem [shape: f32[16,128], index: 6, kind: output, shape index: {}]  }
   0x1 LB: > { %s656_s22 = sadd.s32 4294967295, %s610_s21   ;;  %p527_p0 = scmp.ge.s32.totalorder %s610_s21, 1  ;;  %s610_s21 = sphi %s650_s21, %s16_s21  }
   0x2   : > { %p220_p1 = scmp.lt.s32.totalorder %s610_s21, 3 }
   0x4   : > { %p221_p2 = pnand %p527_p0, %p220_p1 }
   0x5   : > { %p252_p3 = scmp.lt.s32.totalorder (!%p221_p2), %s656_s22, 1  ;;  %v612_v0 = vmov (!%p221_p2), 0   ;;  %v613_v1 = vmov (!%p221_p2), 0.0   ;;  %v595_v3 = vld [vmem:[%s716_s3] sm:$0xff] (!%p221_p2)   ;;  %vm614_vm0 = vmmov (!%p221_p2), 0   ;;  %v597_v5 = vld [vmem:[%s717_s4 + $0x8] sm:$0xff] (!%p221_p2)   ;;  %v266_v11 = vlaneseq (!%p221_p2) }
   0x6   : > { %224 = sbr.rel (%p221_p2) target bundleno = 583 (0x247), region = 44  ;;  %594 = vset.pattern.permute.xlu0 (!%p221_p2), %v612_v0  ;;  %557 = vmatprep.subr.bf16.mxu0 (!%p221_p2), %v613_v1  ;;  %v596_v4 = vld [vmem:[%s717_s4] sm:$0xff] (!%p221_p2)   ;;  %v598_v6 = vld [vmem:[%s717_s4 + $0x10] sm:$0xff] (!%p221_p2)   ;;  %v599_v7 = vld [vmem:[%s717_s4 + $0x18] sm:$0xff] (!%p221_p2)   ;;  %s531_s20 = sshll.u32 (!%p221_p2), %s656_s22, 3  ;;  %vm300_vm2 = vcmask (!%p221_p2), 130048  }
   0x7   : > { %563 = vmatprep.subr.bf16.mxu1 (!%p221_p2), %v613_v1  ;;  %558 = vmatpush3.bf16.msra.mxu0 (!%p221_p2), %v595_v3  ;;  %v600_v8 = vld [vmem:[%s717_s4 + $0x20] sm:$0xff] (!%p221_p2)   ;;  %v601_v9 = vld [vmem:[%s717_s4 + $0x28] sm:$0xff] (!%p221_p2)   ;;  %v602_v10 = vld [vmem:[%s717_s4 + $0x30] sm:$0xff] (!%p221_p2)   ;;  %v267_v12 = vshrl.u32 (!%p221_p2), %v266_v11, 7  ;;  %v268_v13 = vstv (!%p221_p2), %s531_s20  ;;  %v271_v15 = vand.u32 (!%p221_p2), 127, %v266_v11 }
   0x8   : > { %559 = vmatprep.mubr.msk.bf16.mxu0 (!%p221_p2), %vm614_vm0, %v613_v1  ;;  %579 = vmatprep.mubr.msk.bf16.mxu1 (!%p221_p2), %vm614_vm0, %v613_v1  ;;  %v532_v19 = vld [vmem:[%s715_s2] ss:$0 sm:$0xff] (!%p221_p2)  ;;  %v603_v24 = vld [vmem:[%s717_s4 + $0x38] sm:$0xff] (!%p221_p2)  }
   0x9   : > { %564 = vmatpush3.bf16.msra.mxu1 (!%p221_p2), %v596_v4  ;;  %v269_v14 = vadd.s32 (!%p221_p2), %v268_v13, %v267_v12  ;;  %v535_v30 = vld [vmem:[%s718_s5] ss:$0 sm:$0xff] (!%p221_p2) }
   0xa   : > { %565 = vmatprep.subr.bf16.mxu1 (!%p221_p2), %v613_v1 }
   0xb   : > { %vm272_vm1 = vcmp.eq.s32.totalorder (!%p221_p2), %v269_v14, %v271_v15 }
   0xc   : > { %v273_v16 = vsel (!%p221_p2), %vm272_vm1, 1.0, %v613_v1 }
   0xd   : > { %s253_s23 = scalar_select %p252_p3, %s656_s22, 1  ;;  %566 = vmatpush3.bf16.msra.mxu1 %v597_v5 }
   0xe   : > { %567 = vmatprep.subr.bf16.mxu1 %v613_v1 }
   0xf   : > { %s662_s24 = sshll.u32 %s253_s23, 3 }
  0x10   : > { %s259_s27 = scalar_lea.vmem %s714_s1, %s662_s24  ;;  %s255_s26 = scalar_lea.vmem %s713_s0, %s662_s24 }
  0x11   : > { %v276_v2 = vld [vmem:[%s259_s27] sm:$0xff]  ;;  %568 = vmatpush3.bf16.msra.mxu1 %v598_v6  ;;  %s263_s10 = scalar_lea.vmem %s719_s6, %s662_s24 }
  0x12   : > { %279 = vperm.xlu0 %594, %v276_v2   ;;  %569 = vmatprep.subr.bf16.mxu1 %v613_v1  ;;  %v274_v17 = vld [vmem:[%s255_s26] sm:$0xff] }
  0x13   : > { %v275_v18 = vadd.f32 %v274_v17, %v273_v16 }
  0x15   : > { %570 = vmatpush3.bf16.msra.mxu1 %v599_v7 }
  0x16   : > { %571 = vmatprep.subr.bf16.mxu1 %v613_v1 }
  0x19   : > { %572 = vmatpush3.bf16.msra.mxu1 %v600_v8 }
  0x1a   : > { %573 = vmatprep.subr.bf16.mxu1 %v613_v1 }
  0x1d   : > { %574 = vmatpush3.bf16.msra.mxu1 %v601_v9 }
  0x1e   : > { %575 = vmatprep.subr.bf16.mxu1 %v613_v1 }
  0x21   : > { %576 = vmatpush3.bf16.msra.mxu1 %v602_v10 }
  0x22   : > { %577 = vmatprep.subr.bf16.mxu1 %v613_v1 }
  0x25   : > { %578 = vmatpush3.bf16.msra.mxu1 %v603_v24 }
  0x91   : > { %v280_v20 = vpop.permute.xlu0 %279 }
  0x92   : > { %v282_v21 = vmul.f32 %v280_v20, %v275_v18 }
  0x94   : > { %v290_v22 = vmul.f32 %v532_v19, %v282_v21 }
  0x96   : > { %v291_v23 = vpack.c.bf16 %v290_v22, %v290_v22 }
  0x98   : > { %560 = vmatmul.mubr.msk.bf16.vlgmr.msra.gmra.mrb[0].mxu0 %vm300_vm2, %v291_v23 }
 0x16b   : > { %v338_v25 = vpop.f32.mrb[0].mxu0 }
 0x16c   : > { %v344_v26 = vpack.c.bf16 %v338_v25, %v338_v25  ;;  %v561_v27 = vpop.f32.mrb[1].mxu0 }
 0x16d   : > { %v341_v28 = vpop.f32.mrb[2].mxu0 }
 0x16e   : > { %v562_v29 = vpop.f32.mrb[3].mxu0  ;;  %580 = vmatmul.mubr.bf16.vlgmr.msra.gmra.mrb[0].mxu1 %v344_v26 }
 0x241   : > { %v450_v31 = vpop.f32.mrb[0].mxu1 }
 0x242   : > { %v451_v32 = vadd.f32 %v535_v30, %v450_v31  ;;  %v581_v33 = vpop.f32.mrb[1].mxu1 }
 0x243   : > { %v453_v34 = vpop.f32.mrb[2].mxu1 }
 0x244   : > { %v456_v35 = vmax.f32 %v451_v32, 0.0  ;;  %v582_v36 = vpop.f32.mrb[3].mxu1 }
 0x246   : > { %457 = vst [vmem:[%s263_s10] sm:$0xff] %v456_v35 }
 0x247 PF: > { %s16_s21 = sadd.s32 1, %s610_s21  }
 0x248   : > { %p13_p4 = scmp.ge.s32.totalorder %s16_s21, 4  }
 0x24a   :  { %15 = sbr.rel (!%p13_p4) target bundleno = 1 (0x1), region = 77 }

// kernel: relavant_learner_forward.3
= control target key start
LH: loop header
LB: loop body
LE: loop exit
PB: predicated region body
PF: predicated region fallthrough
CT: control target
= control target key end

     0   :  { %11 = vsyncpa [#allocation3], 0  ;;  %s894_s0 = inlined_call_operand.vmem [shape: f32[16,16], index: 0, kind: input, shape index: {}]   ;;  %s895_s1 = inlined_call_operand.vmem [shape: f32[16,1], index: 1, kind: input, shape index: {}]   ;;  %s896_s2 = inlined_call_operand.vmem [shape: f32[1,16], index: 2, kind: input, shape index: {}]   ;;  %s897_s3 = inlined_call_operand.vmem [shape: f32[16,128], index: 3, kind: input, shape index: {}]   ;;  %s898_s4 = inlined_call_operand.vmem [shape: bf16[128,128], index: 4, kind: input, shape index: {}]   ;;  %s899_s5 = inlined_call_operand.vmem [shape: f32[1,128], index: 5, kind: input, shape index: {}]   ;;  %s900_s6 = inlined_call_operand.hbm [shape: f32[16,128], index: 6, kind: output, shape index: {}]  }
   0x1   :  { %13 = vsyncpa [#allocation3 + $0x1], 0  ;;  %s754_s21 = smov 0   ;;  %s756_s22 = smov 0  }
   0x2   :  { %s758_s23 = smov 0   ;;  %s760_s24 = smov 0  }
   0x3 LB: > { %s775_s25 = sadd.s32 4294967295, %s713_s24   ;;  %s538_s26 = sadd.s32 4294967294, %s713_s24   ;;  %s713_s24 = sphi %s760_s24, %s906_s24   ;;  %s709_s23 = sphi %s758_s23, %s905_s23   ;;  %s705_s22 = sphi %s756_s22, %s904_s22   ;;  %s701_s21 = sphi %s754_s21, %s903_s21  }
   0x4   : > { %s779_s27 = sadd.s32 1, %s713_s24   ;;  %s162_s28 = sadd.s32 1, %s709_s23 }
   0x5   : > { %s159_s29 = ssub.s32 %s713_s24, %s779_s27  ;;  %p172_p0 = scmp.ne.s32.totalorder %s709_s23, %s705_s22 }
   0x6   : > { %p160_p1 = scmp.eq.s32.totalorder %s159_s29, 0  ;;  %p173_p2 = scmp.eq.s32.totalorder %s775_s25, 1 }
   0x7   : > { %p178_p3 = scmp.ne.s32.totalorder %s705_s22, %s701_s21  ;;  %p179_p4 = scmp.eq.s32.totalorder %s538_s26, 1 }
   0x8   : > { %s790_s30 = scalar_select %p160_p1, %s709_s23, %s162_s28  }
   0x9   : > { %p792_p5 = por %p173_p2, %p172_p0  ;;  %p796_p6 = por %p179_p4, %p178_p3 }
   0xa   : > { %p541_p7 = scmp.ge.s32.totalorder %s713_s24, 1  ;;  %p223_p8 = scmp.lt.s32.totalorder %s713_s24, 3 }
   0xc   : > { %p224_p9 = pnand %p541_p7, %p223_p8 }
   0xd   : > { %p256_p10 = scmp.lt.s32.totalorder (!%p224_p9), %s775_s25, 1  ;;  %s545_s9 = sshll.u32 (!%p224_p9), %s775_s25, 3  ;;  %v266_v0 = vlaneseq (!%p224_p9)  ;;  %v715_v1 = vmov (!%p224_p9), 0   ;;  %v716_v3 = vmov (!%p224_p9), 0.0   ;;  %v292_v10 = vld [vmem:[%s897_s3] sm:$0xff] (!%p224_p9)  ;;  %v293_v11 = vld [vmem:[%s897_s3 + $0x8] sm:$0xff] (!%p224_p9) }
   0xe   : > { %227 = sbr.rel (%p224_p9) target bundleno = 613 (0x265), region = 44  ;;  %640 = vset.pattern.permute.xlu0 (!%p224_p9), %v715_v1  ;;  %v268_v2 = vstv (!%p224_p9), %s545_s9  ;;  %572 = vmatprep.subr.bf16.mxu0 (!%p224_p9), %v716_v3  ;;  %v294_v13 = vpack.c.bf16 (!%p224_p9), %v293_v11, %v292_v10  ;;  %vm717_vm1 = vmmov (!%p224_p9), 0   ;;  %v641_v14 = vld [vmem:[%s898_s4] sm:$0xff] (!%p224_p9)   ;;  %v642_v15 = vld [vmem:[%s898_s4 + $0x8] sm:$0xff] (!%p224_p9)   ;;  %v643_v16 = vld [vmem:[%s898_s4 + $0x10] sm:$0xff] (!%p224_p9)   ;;  %vm295_vm2 = vcmask (!%p224_p9), 130048  }
   0xf   : > { %v267_v4 = vshrl.u32 (!%p224_p9), %v266_v0, 7  ;;  %v271_v5 = vand.u32 (!%p224_p9), 127, %v266_v0  ;;  %578 = vmatprep.subr.bf16.mxu1 (!%p224_p9), %v716_v3  ;;  %574 = vmatprep.mubr.msk.bf16.mxu0 (!%p224_p9), %vm717_vm1, %v716_v3  ;;  %v644_v17 = vld [vmem:[%s898_s4 + $0x18] sm:$0xff] (!%p224_p9)   ;;  %v645_v18 = vld [vmem:[%s898_s4 + $0x20] sm:$0xff] (!%p224_p9)   ;;  %v646_v19 = vld [vmem:[%s898_s4 + $0x28] sm:$0xff] (!%p224_p9)   ;;  %s253_s12 = sand.u32 (!%p224_p9), 1, %s705_s22  }
  0x10   : > { %573 = vmatpush3.bf16.msra.mxu0 (!%p224_p9), %v294_v13  ;;  %594 = vmatprep.mubr.msk.bf16.mxu1 (!%p224_p9), %vm717_vm1, %v716_v3  ;;  %v647_v20 = vld [vmem:[%s898_s4 + $0x30] sm:$0xff] (!%p224_p9)   ;;  %v546_v21 = vld [vmem:[%s896_s2] ss:$0 sm:$0xff] (!%p224_p9)  ;;  %v648_v26 = vld [vmem:[%s898_s4 + $0x38] sm:$0xff] (!%p224_p9)   ;;  %s542_s13 = sshll.u32 (!%p224_p9), %s253_s12, 3  ;;  %s454_s20 = scalar_lea.sflag (!%p224_p9), [#allocation3], %s253_s12 }
  0x11   : > { %v269_v6 = vadd.s32 (!%p224_p9), %v268_v2, %v267_v4  ;;  %579 = vmatpush3.bf16.msra.mxu1 (!%p224_p9), %v641_v14  ;;  %v548_v32 = vld [vmem:[%s899_s5] ss:$0 sm:$0xff] (!%p224_p9)  ;;  %s255_s15 = scalar_lea.vmem (!%p224_p9), [#allocation2], %s542_s13 }
  0x12   : > { %580 = vmatprep.subr.bf16.mxu1 (!%p224_p9), %v716_v3  ;;  %s467_s16 = sshll.u32 (!%p224_p9), %s255_s15, 4  ;;  %s854_s16 = int_to_ptr.vmem [resolvable:$true] %s467_s16 }
  0x13   : > { %vm272_vm0 = vcmp.eq.s32.totalorder (!%p224_p9), %v269_v6, %v271_v5  ;;  %s651_s26 = scalar_lea.vmem (!%p224_p9), %s854_s16, 128 }
  0x14   : > { %v273_v9 = vsel (!%p224_p9), %vm272_vm0, 1.0, %v716_v3  ;;  %p652_p11 = scmp.ne.s32.totalorder (!%p224_p9), %s854_s16, %s651_s26 }
  0x15   : > { %s257_s10 = scalar_select %p256_p10, %s775_s25, 1  ;;  %581 = vmatpush3.bf16.msra.mxu1 %v642_v15 }
  0x16   : > { %582 = vmatprep.subr.bf16.mxu1 %v716_v3  ;;  %p653_p12 = pnand %p652_p11, %p792_p5 }
  0x17   : > { %s543_s11 = sshll.u32 %s257_s10, 3 }
  0x18   : > { %s263_s14 = scalar_lea.vmem %s895_s1, %s543_s11  ;;  %s259_s17 = scalar_lea.vmem %s894_s0, %s543_s11 }
  0x19   : > { %v276_v7 = vld [vmem:[%s263_s14] sm:$0xff]  ;;  %583 = vmatpush3.bf16.msra.mxu1 %v643_v16  ;;  %s558_s14 = sshll.u32 %s775_s25, 7  ;;  %p654_p13 = pneg %p653_p12 }
  0x1a   : > { %v274_v8 = vld [vmem:[%s259_s17] sm:$0xff]  ;;  %279 = vperm.xlu0 %640, %v276_v7   ;;  %584 = vmatprep.subr.bf16.mxu1 %v716_v3  ;;  %s852_s19 = scalar_lea.hbm %s900_s6, %s558_s14  ;;  %s718_s25 = smov [#allocation2]  }
  0x1b   : > { %v275_v12 = vadd.f32 %v274_v8, %v273_v9  ;;  %s655_s28 = sshll.u32 %s718_s25, 4  ;;  %s656_s28 = int_to_ptr.vmem [resolvable:$false] %s655_s28 }
  0x1c   : > { %s657_s29 = scalar_lea.vmem %s656_s28, 256  ;;  %p658_p0 = scmp.lt.s32.totalorder %s854_s16, %s656_s28 }
  0x1d   : > { %585 = vmatpush3.bf16.msra.mxu1 %v644_v17  ;;  %p659_p1 = scmp.lt.s32.totalorder %s657_s29, %s651_s26 }
  0x1e   : > { %586 = vmatprep.subr.bf16.mxu1 %v716_v3 }
  0x1f   : > { %p660_p2 = por %p659_p1, %p658_p0 }
  0x21   : > { %587 = vmatpush3.bf16.msra.mxu1 %v645_v18  ;;  %p661_p3 = pnand %p660_p2, %p654_p13 }
  0x22   : > { %588 = vmatprep.subr.bf16.mxu1 %v716_v3 }
  0x25   : > { %589 = vmatpush3.bf16.msra.mxu1 %v646_v19 }
  0x26   : > { %590 = vmatprep.subr.bf16.mxu1 %v716_v3 }
  0x29   : > { %591 = vmatpush3.bf16.msra.mxu1 %v647_v20 }
  0x2a   : > { %592 = vmatprep.subr.bf16.mxu1 %v716_v3 }
  0x2d   : > { %593 = vmatpush3.bf16.msra.mxu1 %v648_v26 }
  0x99   : > { %v280_v22 = vpop.permute.xlu0 %279 }
  0x9a   : > { %v282_v23 = vmul.f32 %v280_v22, %v275_v12 }
  0x9c   : > { %v290_v24 = vmul.f32 %v546_v21, %v282_v23 }
  0x9e   : > { %v291_v25 = vpack.c.bf16 %v290_v24, %v290_v24 }
  0xa0   : > { %575 = vmatmul.mubr.msk.bf16.vlgmr.msra.gmra.mrb[0].mxu0 %vm295_vm2, %v291_v25 }
 0x173   : > { %v333_v27 = vpop.f32.mrb[0].mxu0 }
 0x174   : > { %v339_v28 = vpack.c.bf16 %v333_v27, %v333_v27  ;;  %v576_v29 = vpop.f32.mrb[1].mxu0 }
 0x175   : > { %v336_v30 = vpop.f32.mrb[2].mxu0 }
 0x176   : > { %v577_v31 = vpop.f32.mrb[3].mxu0  ;;  %595 = vmatmul.mubr.bf16.vlgmr.msra.gmra.mrb[0].mxu1 %v339_v28 }
 0x249   : > { %v445_v33 = vpop.f32.mrb[0].mxu1 }
 0x24a   : > { %v446_v34 = vadd.f32 %v548_v32, %v445_v33  ;;  %v596_v35 = vpop.f32.mrb[1].mxu1 }
 0x24b   : > { %v448_v36 = vpop.f32.mrb[2].mxu1 }
 0x24c   : > { %649 = vtanh.f32 %v446_v34  ;;  %v597_v37 = vpop.f32.mrb[3].mxu1 }
 0x256   : > { %v650_v38 = vpop.eup %649 }
 0x257   : > { %452 = vst [vmem:[%s255_s15] sm:$0xff] %v650_v38 }
 0x258   : > { %664 = shalt.err (!%p661_p3)
}
 0x259   : > { %s665_s9 = scalar_lea.hbm %s852_s19, 128  ;;  %s669_s12 = scalar_lea.hbm %s900_s6, 256 }
 0x25a   : > { %p666_p4 = scmp.ne.s32.totalorder %s852_s19, %s665_s9  ;;  %p670_p9 = scmp.lt.u32.totalorder %s852_s19, %s900_s6 }
 0x25b   : > { %p671_p10 = scmp.lt.u32.totalorder %s669_s12, %s665_s9  ;;  %p673_p12 = scmp.lt.u32.totalorder %s665_s9, %s852_s19 }
 0x25c   : > { %p667_p7 = pnand %p666_p4, %p792_p5 }
 0x25d   : > { %p672_p11 = por %p671_p10, %p670_p9 }
 0x25e   : > { %p668_p8 = pneg %p667_p7 }
 0x25f   : > { %p674_p13 = por %p673_p12, %p672_p11 }
 0x261   : > { %p675_p0 = pnand %p674_p13, %p668_p8 }
 0x263   : > { %678 = shalt.err (!%p675_p0)
}
 0x264   : > { %598 = dma.vmem_to_hbm [thread:$0]  (%p792_p5), %s854_s16, 128, %s852_s19, %s454_s20  }
 0x265 PF: > { %p604_p1 = scmp.ge.s32.totalorder %s713_s24, 2  ;;  %s479_s15 = sand.u32 1, %s701_s21  }
 0x266   : > { %s480_s17 = scalar_lea.sflag [#allocation3], %s479_s15 }
 0x267   : > { %p601_p2 = pnand %p604_p1, %p796_p6 }
 0x269   : > { %696 = dma.done.wait (!%p601_p2), %s480_s17, 128  }
 0x26a   : > { %698 = vsyncadd (!%p601_p2), %s480_s17, 4294967168  ;;  %p16_p3 = scmp.ge.s32.totalorder %s779_s27, 4   ;;  %s903_s21 = smov %s705_s22 }
 0x26b   : > { %s904_s22 = smov %s709_s23  ;;  %s905_s23 = smov %s790_s30 }
 0x26c   : > { %s906_s24 = smov %s779_s27  ;;  %18 = sbr.rel (!%p16_p3) target bundleno = 3 (0x3), region = 82 }
 0x273   :  { %485 = vsyncpa [#allocation3], 1 }
 0x274   :  { %487 = vsyncpa [#allocation3 + $0x1], 1 }

</bundles_post_ra>
